<compile_context>
chip_gen: v7x
topology: tpu7x:2x2x1
jax: 0.10.0
libtpu: 0.0.40
codegen_flags: <defaults>
</compile_context>

<pallas_src>
import functools

import jax
import jax.numpy as jnp
from jax.experimental import pallas as pl
from jax.experimental.pallas import tpu as pltpu


def lstm_linear_kernel(x_ref, wih_ref, whh_ref, b_ref, wlin_ref, blin_ref,
                       out_ref, *, T):
    """Full LSTM recurrence over T steps + final Linear, packed gate layout.

    x_ref    : (T*BP, D_in)   bf16, flattened seq-major input (batch padded to BP)
    wih_ref  : (D_in, 4*H)    bf16, W_ih^T with gate column order (i, f, o, g)
    whh_ref  : (H,    4*H)    bf16, W_hh^T, same gate order
    b_ref    : (1,    4*H)    f32,  b_ih + b_hh, same gate order
    wlin_ref : (H, D_out)     bf16, W_lin^T
    blin_ref : (1, D_out)     f32
    out_ref  : (BP, D_out)    f32
    """
    H = whh_ref.shape[0]
    BP = out_ref.shape[0]

    # --- Hoisted input projection (+ bias): one bf16 MXU matmul for all T steps.
    # Result stays a value (T*BP, 4H) f32 -- no scratch round trip.
    gx = jnp.dot(x_ref[...], wih_ref[...],
                 preferred_element_type=jnp.float32) + b_ref[...]

    # Recurrent weight hoisted once; (H, 4H) bf16 = 2 packed vregs, resident for
    # the whole unrolled recurrence.
    whh = whh_ref[...]

    h = jnp.zeros((BP, H), jnp.float32)
    c = jnp.zeros((BP, H), jnp.float32)

    # --- Serial recurrence, statically unrolled (T is small/static). -------------
    for t in range(T):
        # Static, sublane-aligned slice (BP = 8 rows) of the hoisted projection.
        gates = gx[t * BP:(t + 1) * BP, :] + jnp.dot(
            h.astype(jnp.bfloat16), whh, preferred_element_type=jnp.float32)
        # Gate order (i, f, o, g): sigmoid once, tanh(g) once, tanh(c_new) once.
        sg = jax.nn.sigmoid(gates)
        g_g = jnp.tanh(gates[:, 3 * H:4 * H])
        i_g = sg[:, 0 * H:1 * H]
        f_g = sg[:, 1 * H:2 * H]
        o_g = sg[:, 2 * H:3 * H]
        c = f_g * c + i_g * g_g
        h = o_g * jnp.tanh(c)

    # Dropout is identity at inference; final Linear on the last hidden state.
    out_ref[...] = (jnp.dot(h.astype(jnp.bfloat16), wlin_ref[...],
                            preferred_element_type=jnp.float32) + blin_ref[...])


def net_forward(x, params):
    """x: (T, B, D_in) float32 -> (B, D_out) float32."""
    wih_t, whh_t, b, wlin_t, blin = params
    T, B, D_in = x.shape
    D_out = wlin_t.shape[1]

    # Pad batch up to a full sublane group so every in-kernel tile is whole/aligned
    # and MXU rows are better occupied; padded rows are sliced off below (their
    # recurrence is independent, so real rows are unaffected).
    BP = max(8, ((B + 7) // 8) * 8)
    x_p = jnp.pad(x, ((0, 0), (0, BP - B), (0, 0)))
    x2d = x_p.reshape(T * BP, D_in).astype(jnp.bfloat16)

    # Everything (x, weights, gx value) is well under 100 KiB of VMEM -> no grid.
    # For many independent sequences / large T, add a leading "parallel" grid axis
    # (uses both v7x TensorCores) and stream x per-step; not needed at this size.
    out = pl.pallas_call(
        functools.partial(lstm_linear_kernel, T=T),
        out_shape=jax.ShapeDtypeStruct((BP, D_out), jnp.float32),
        in_specs=[pl.BlockSpec(memory_space=pltpu.MemorySpace.VMEM)] * 6,
        out_specs=pl.BlockSpec(memory_space=pltpu.MemorySpace.VMEM),
    )(x2d, wih_t, whh_t, b, wlin_t, blin)
    return out[:B]


def init_raw_params(key, input_dim, hidden_dim, output_dim):
    """PyTorch-shaped parameters (gate order i,f,g,o), matching the module's init."""
    k1, k2, k3, k4, k5, k6 = jax.random.split(key, 6)
    stdv = 1.0 / jnp.sqrt(hidden_dim)
    w_ih = jax.random.uniform(k1, (4 * hidden_dim, input_dim),
                              minval=-stdv, maxval=stdv, dtype=jnp.float32)
    w_hh = jax.random.uniform(k2, (4 * hidden_dim, hidden_dim),
                              minval=-stdv, maxval=stdv, dtype=jnp.float32)
    b_ih = jax.random.uniform(k3, (4 * hidden_dim,),
                              minval=-stdv, maxval=stdv, dtype=jnp.float32)
    b_hh = jax.random.uniform(k4, (4 * hidden_dim,),
                              minval=-stdv, maxval=stdv, dtype=jnp.float32)
    w_lin = jax.random.normal(k5, (output_dim, hidden_dim), dtype=jnp.float32)  # normal_ init
    b_lin = jax.random.uniform(k6, (output_dim,),
                               minval=-stdv, maxval=stdv, dtype=jnp.float32)
    return w_ih, w_hh, b_ih, b_hh, w_lin, b_lin


def pack_params_for_kernel(raw):
    """Transpose + pack gates contiguously (4*H lanes total), reordered to (i,f,o,g).

    Matmul operands are cast to bf16 (MXU-native); biases stay f32 and are added
    to the f32 accumulator.
    """
    w_ih, w_hh, b_ih, b_hh, w_lin, b_lin = raw
    H = w_hh.shape[1]
    order = (0, 1, 3, 2)  # PyTorch (i, f, g, o) -> packed (i, f, o, g)
    b_sum = b_ih + b_hh
    wih_t = jnp.concatenate([w_ih[g * H:(g + 1) * H, :].T for g in order], axis=1)
    whh_t = jnp.concatenate([w_hh[g * H:(g + 1) * H, :].T for g in order], axis=1)
    bias = jnp.concatenate([b_sum[g * H:(g + 1) * H] for g in order])[None, :]
    wlin_t = w_lin.T
    blin = b_lin[None, :]
    return (wih_t.astype(jnp.bfloat16), whh_t.astype(jnp.bfloat16),
            bias.astype(jnp.float32), wlin_t.astype(jnp.bfloat16),
            blin.astype(jnp.float32))


def net_forward_ref(x, raw, hidden_dim):
    """Pure-JAX f32 reference on the un-packed PyTorch-shaped weights."""
    w_ih, w_hh, b_ih, b_hh, w_lin, b_lin = raw
    T, B, _ = x.shape
    H = hidden_dim
    h = jnp.zeros((B, H), jnp.float32)
    c = jnp.zeros((B, H), jnp.float32)
    bias = b_ih + b_hh
    for t in range(T):
        gates = x[t] @ w_ih.T + h @ w_hh.T + bias
        i = jax.nn.sigmoid(gates[:, 0 * H:1 * H])
        f = jax.nn.sigmoid(gates[:, 1 * H:2 * H])
        g = jnp.tanh(gates[:, 2 * H:3 * H])
        o = jax.nn.sigmoid(gates[:, 3 * H:4 * H])
        c = f * c + i * g
        h = o * jnp.tanh(c)
    return h @ w_lin.T + b_lin[None, :]


if __name__ == "__main__":
    # Small shapes consistent with the module's forward:
    # input_dim=16, hidden_dim=32, output_dim=4, batch=2, seq=8.
    T, B, D_in, H, D_out = 8, 2, 16, 32, 4

    key = jax.random.PRNGKey(0)
    k_x, k_p = jax.random.split(key)
    x = jax.random.normal(k_x, (T, B, D_in), dtype=jnp.float32)

    raw = init_raw_params(k_p, D_in, H, D_out)
    params = pack_params_for_kernel(raw)

    y = jax.block_until_ready(net_forward(x, params))
    y_ref = net_forward_ref(x, raw, H)

    assert y.shape == (B, D_out)
    # bf16 MXU operands => compare at bf16-level tolerance, scaled to output magnitude.
    err = float(jnp.max(jnp.abs(y - y_ref)))
    scale = float(jnp.max(jnp.abs(y_ref))) + 1.0
    assert err <= 5e-2 * scale, (err, y, y_ref)
    print("KERNEL_OK")
</pallas_src>

<mosaic_0001>
module attributes {stable_mosaic.version = 11 : i64} {
  func.func @lstm_linear_kernel(%arg0: memref<64x16xbf16, #tpu.memory_space<vmem>>, %arg1: memref<16x128xbf16, #tpu.memory_space<vmem>>, %arg2: memref<32x128xbf16, #tpu.memory_space<vmem>>, %arg3: memref<1x128xf32, #tpu.memory_space<vmem>>, %arg4: memref<32x4xbf16, #tpu.memory_space<vmem>>, %arg5: memref<1x4xf32, #tpu.memory_space<vmem>>, %arg6: memref<8x4xf32, #tpu.memory_space<vmem>>) attributes {dimension_semantics = [], scalar_prefetch = 0 : i64, scratch_operands = 0 : i64, tpu.core_type = #tpu.core_type<tc>} {
    %c0 = arith.constant 0 : index
    %c0_0 = arith.constant 0 : index
    %0 = vector.load %arg0[%c0, %c0_0] : memref<64x16xbf16, #tpu.memory_space<vmem>>, vector<64x16xbf16>
    %c0_1 = arith.constant 0 : index
    %c0_2 = arith.constant 0 : index
    %1 = vector.load %arg1[%c0_1, %c0_2] : memref<16x128xbf16, #tpu.memory_space<vmem>>, vector<16x128xbf16>
    %cst = arith.constant dense<0.000000e+00> : vector<64x128xf32>
    %2 = tpu.matmul %0, %1, %cst {dimension_numbers = #tpu.dot_dimension_numbers<[1], [0], [0], [1], [0, 0, 1, 1], [], []>} : vector<64x16xbf16>, vector<16x128xbf16>, vector<64x128xf32> -> vector<64x128xf32>
    %c0_3 = arith.constant 0 : index
    %c0_4 = arith.constant 0 : index
    %3 = vector.load %arg3[%c0_3, %c0_4] : memref<1x128xf32, #tpu.memory_space<vmem>>, vector<1x128xf32>
    %4 = vector.broadcast %3 : vector<1x128xf32> to vector<64x128xf32>
    %5 = arith.addf %2, %4 : vector<64x128xf32>
    %c0_5 = arith.constant 0 : index
    %c0_6 = arith.constant 0 : index
    %6 = vector.load %arg2[%c0_5, %c0_6] : memref<32x128xbf16, #tpu.memory_space<vmem>>, vector<32x128xbf16>
    %cst_7 = arith.constant 0.000000e+00 : f32
    %7 = vector.broadcast %cst_7 : f32 to vector<8x32xf32>
    %cst_8 = arith.constant 0.000000e+00 : f32
    %8 = vector.broadcast %cst_8 : f32 to vector<8x32xf32>
    %9 = vector.extract_strided_slice %5 {offsets = [0, 0], sizes = [8, 128], strides = [1, 1]} : vector<64x128xf32> to vector<8x128xf32>
    %10 = arith.truncf %7 : vector<8x32xf32> to vector<8x32xbf16>
    %cst_9 = arith.constant dense<0.000000e+00> : vector<8x128xf32>
    %11 = tpu.matmul %10, %6, %cst_9 {dimension_numbers = #tpu.dot_dimension_numbers<[1], [0], [0], [1], [0, 0, 1, 1], [], []>} : vector<8x32xbf16>, vector<32x128xbf16>, vector<8x128xf32> -> vector<8x128xf32>
    %12 = arith.addf %9, %11 : vector<8x128xf32>
    %13 = arith.negf %12 : vector<8x128xf32>
    %14 = math.exp %13 : vector<8x128xf32>
    %cst_10 = arith.constant 1.000000e+00 : f32
    %15 = vector.broadcast %cst_10 : f32 to vector<8x128xf32>
    %16 = arith.addf %15, %14 : vector<8x128xf32>
    %17 = arith.divf %15, %16 : vector<8x128xf32>
    %18 = vector.extract_strided_slice %12 {offsets = [0, 96], sizes = [8, 32], strides = [1, 1]} : vector<8x128xf32> to vector<8x32xf32>
    %19 = math.tanh %18 : vector<8x32xf32>
    %20 = vector.extract_strided_slice %17 {offsets = [0, 0], sizes = [8, 32], strides = [1, 1]} : vector<8x128xf32> to vector<8x32xf32>
    %21 = vector.extract_strided_slice %17 {offsets = [0, 32], sizes = [8, 32], strides = [1, 1]} : vector<8x128xf32> to vector<8x32xf32>
    %22 = vector.extract_strided_slice %17 {offsets = [0, 64], sizes = [8, 32], strides = [1, 1]} : vector<8x128xf32> to vector<8x32xf32>
    %23 = arith.mulf %21, %8 : vector<8x32xf32>
    %24 = arith.mulf %20, %19 : vector<8x32xf32>
    %25 = arith.addf %23, %24 : vector<8x32xf32>
    %26 = math.tanh %25 : vector<8x32xf32>
    %27 = arith.mulf %22, %26 : vector<8x32xf32>
    %28 = vector.extract_strided_slice %5 {offsets = [8, 0], sizes = [8, 128], strides = [1, 1]} : vector<64x128xf32> to vector<8x128xf32>
    %29 = arith.truncf %27 : vector<8x32xf32> to vector<8x32xbf16>
    %cst_11 = arith.constant dense<0.000000e+00> : vector<8x128xf32>
    %30 = tpu.matmul %29, %6, %cst_11 {dimension_numbers = #tpu.dot_dimension_numbers<[1], [0], [0], [1], [0, 0, 1, 1], [], []>} : vector<8x32xbf16>, vector<32x128xbf16>, vector<8x128xf32> -> vector<8x128xf32>
    %31 = arith.addf %28, %30 : vector<8x128xf32>
    %32 = arith.negf %31 : vector<8x128xf32>
    %33 = math.exp %32 : vector<8x128xf32>
    %cst_12 = arith.constant 1.000000e+00 : f32
    %34 = vector.broadcast %cst_12 : f32 to vector<8x128xf32>
    %35 = arith.addf %34, %33 : vector<8x128xf32>
    %36 = arith.divf %34, %35 : vector<8x128xf32>
    %37 = vector.extract_strided_slice %31 {offsets = [0, 96], sizes = [8, 32], strides = [1, 1]} : vector<8x128xf32> to vector<8x32xf32>
    %38 = math.tanh %37 : vector<8x32xf32>
    %39 = vector.extract_strided_slice %36 {offsets = [0, 0], sizes = [8, 32], strides = [1, 1]} : vector<8x128xf32> to vector<8x32xf32>
    %40 = vector.extract_strided_slice %36 {offsets = [0, 32], sizes = [8, 32], strides = [1, 1]} : vector<8x128xf32> to vector<8x32xf32>
    %41 = vector.extract_strided_slice %36 {offsets = [0, 64], sizes = [8, 32], strides = [1, 1]} : vector<8x128xf32> to vector<8x32xf32>
    %42 = arith.mulf %40, %25 : vector<8x32xf32>
    %43 = arith.mulf %39, %38 : vector<8x32xf32>
    %44 = arith.addf %42, %43 : vector<8x32xf32>
    %45 = math.tanh %44 : vector<8x32xf32>
    %46 = arith.mulf %41, %45 : vector<8x32xf32>
    %47 = vector.extract_strided_slice %5 {offsets = [16, 0], sizes = [8, 128], strides = [1, 1]} : vector<64x128xf32> to vector<8x128xf32>
    %48 = arith.truncf %46 : vector<8x32xf32> to vector<8x32xbf16>
    %cst_13 = arith.constant dense<0.000000e+00> : vector<8x128xf32>
    %49 = tpu.matmul %48, %6, %cst_13 {dimension_numbers = #tpu.dot_dimension_numbers<[1], [0], [0], [1], [0, 0, 1, 1], [], []>} : vector<8x32xbf16>, vector<32x128xbf16>, vector<8x128xf32> -> vector<8x128xf32>
    %50 = arith.addf %47, %49 : vector<8x128xf32>
    %51 = arith.negf %50 : vector<8x128xf32>
    %52 = math.exp %51 : vector<8x128xf32>
    %cst_14 = arith.constant 1.000000e+00 : f32
    %53 = vector.broadcast %cst_14 : f32 to vector<8x128xf32>
    %54 = arith.addf %53, %52 : vector<8x128xf32>
    %55 = arith.divf %53, %54 : vector<8x128xf32>
    %56 = vector.extract_strided_slice %50 {offsets = [0, 96], sizes = [8, 32], strides = [1, 1]} : vector<8x128xf32> to vector<8x32xf32>
    %57 = math.tanh %56 : vector<8x32xf32>
    %58 = vector.extract_strided_slice %55 {offsets = [0, 0], sizes = [8, 32], strides = [1, 1]} : vector<8x128xf32> to vector<8x32xf32>
    %59 = vector.extract_strided_slice %55 {offsets = [0, 32], sizes = [8, 32], strides = [1, 1]} : vector<8x128xf32> to vector<8x32xf32>
    %60 = vector.extract_strided_slice %55 {offsets = [0, 64], sizes = [8, 32], strides = [1, 1]} : vector<8x128xf32> to vector<8x32xf32>
    %61 = arith.mulf %59, %44 : vector<8x32xf32>
    %62 = arith.mulf %58, %57 : vector<8x32xf32>
    %63 = arith.addf %61, %62 : vector<8x32xf32>
    %64 = math.tanh %63 : vector<8x32xf32>
    %65 = arith.mulf %60, %64 : vector<8x32xf32>
    %66 = vector.extract_strided_slice %5 {offsets = [24, 0], sizes = [8, 128], strides = [1, 1]} : vector<64x128xf32> to vector<8x128xf32>
    %67 = arith.truncf %65 : vector<8x32xf32> to vector<8x32xbf16>
    %cst_15 = arith.constant dense<0.000000e+00> : vector<8x128xf32>
    %68 = tpu.matmul %67, %6, %cst_15 {dimension_numbers = #tpu.dot_dimension_numbers<[1], [0], [0], [1], [0, 0, 1, 1], [], []>} : vector<8x32xbf16>, vector<32x128xbf16>, vector<8x128xf32> -> vector<8x128xf32>
    %69 = arith.addf %66, %68 : vector<8x128xf32>
    %70 = arith.negf %69 : vector<8x128xf32>
    %71 = math.exp %70 : vector<8x128xf32>
    %cst_16 = arith.constant 1.000000e+00 : f32
    %72 = vector.broadcast %cst_16 : f32 to vector<8x128xf32>
    %73 = arith.addf %72, %71 : vector<8x128xf32>
    %74 = arith.divf %72, %73 : vector<8x128xf32>
    %75 = vector.extract_strided_slice %69 {offsets = [0, 96], sizes = [8, 32], strides = [1, 1]} : vector<8x128xf32> to vector<8x32xf32>
    %76 = math.tanh %75 : vector<8x32xf32>
    %77 = vector.extract_strided_slice %74 {offsets = [0, 0], sizes = [8, 32], strides = [1, 1]} : vector<8x128xf32> to vector<8x32xf32>
    %78 = vector.extract_strided_slice %74 {offsets = [0, 32], sizes = [8, 32], strides = [1, 1]} : vector<8x128xf32> to vector<8x32xf32>
    %79 = vector.extract_strided_slice %74 {offsets = [0, 64], sizes = [8, 32], strides = [1, 1]} : vector<8x128xf32> to vector<8x32xf32>
    %80 = arith.mulf %78, %63 : vector<8x32xf32>
    %81 = arith.mulf %77, %76 : vector<8x32xf32>
    %82 = arith.addf %80, %81 : vector<8x32xf32>
    %83 = math.tanh %82 : vector<8x32xf32>
    %84 = arith.mulf %79, %83 : vector<8x32xf32>
    %85 = vector.extract_strided_slice %5 {offsets = [32, 0], sizes = [8, 128], strides = [1, 1]} : vector<64x128xf32> to vector<8x128xf32>
    %86 = arith.truncf %84 : vector<8x32xf32> to vector<8x32xbf16>
    %cst_17 = arith.constant dense<0.000000e+00> : vector<8x128xf32>
    %87 = tpu.matmul %86, %6, %cst_17 {dimension_numbers = #tpu.dot_dimension_numbers<[1], [0], [0], [1], [0, 0, 1, 1], [], []>} : vector<8x32xbf16>, vector<32x128xbf16>, vector<8x128xf32> -> vector<8x128xf32>
    %88 = arith.addf %85, %87 : vector<8x128xf32>
    %89 = arith.negf %88 : vector<8x128xf32>
    %90 = math.exp %89 : vector<8x128xf32>
    %cst_18 = arith.constant 1.000000e+00 : f32
    %91 = vector.broadcast %cst_18 : f32 to vector<8x128xf32>
    %92 = arith.addf %91, %90 : vector<8x128xf32>
    %93 = arith.divf %91, %92 : vector<8x128xf32>
    %94 = vector.extract_strided_slice %88 {offsets = [0, 96], sizes = [8, 32], strides = [1, 1]} : vector<8x128xf32> to vector<8x32xf32>
    %95 = math.tanh %94 : vector<8x32xf32>
    %96 = vector.extract_strided_slice %93 {offsets = [0, 0], sizes = [8, 32], strides = [1, 1]} : vector<8x128xf32> to vector<8x32xf32>
    %97 = vector.extract_strided_slice %93 {offsets = [0, 32], sizes = [8, 32], strides = [1, 1]} : vector<8x128xf32> to vector<8x32xf32>
    %98 = vector.extract_strided_slice %93 {offsets = [0, 64], sizes = [8, 32], strides = [1, 1]} : vector<8x128xf32> to vector<8x32xf32>
    %99 = arith.mulf %97, %82 : vector<8x32xf32>
    %100 = arith.mulf %96, %95 : vector<8x32xf32>
    %101 = arith.addf %99, %100 : vector<8x32xf32>
    %102 = math.tanh %101 : vector<8x32xf32>
    %103 = arith.mulf %98, %102 : vector<8x32xf32>
    %104 = vector.extract_strided_slice %5 {offsets = [40, 0], sizes = [8, 128], strides = [1, 1]} : vector<64x128xf32> to vector<8x128xf32>
    %105 = arith.truncf %103 : vector<8x32xf32> to vector<8x32xbf16>
    %cst_19 = arith.constant dense<0.000000e+00> : vector<8x128xf32>
    %106 = tpu.matmul %105, %6, %cst_19 {dimension_numbers = #tpu.dot_dimension_numbers<[1], [0], [0], [1], [0, 0, 1, 1], [], []>} : vector<8x32xbf16>, vector<32x128xbf16>, vector<8x128xf32> -> vector<8x128xf32>
    %107 = arith.addf %104, %106 : vector<8x128xf32>
    %108 = arith.negf %107 : vector<8x128xf32>
    %109 = math.exp %108 : vector<8x128xf32>
    %cst_20 = arith.constant 1.000000e+00 : f32
    %110 = vector.broadcast %cst_20 : f32 to vector<8x128xf32>
    %111 = arith.addf %110, %109 : vector<8x128xf32>
    %112 = arith.divf %110, %111 : vector<8x128xf32>
    %113 = vector.extract_strided_slice %107 {offsets = [0, 96], sizes = [8, 32], strides = [1, 1]} : vector<8x128xf32> to vector<8x32xf32>
    %114 = math.tanh %113 : vector<8x32xf32>
    %115 = vector.extract_strided_slice %112 {offsets = [0, 0], sizes = [8, 32], strides = [1, 1]} : vector<8x128xf32> to vector<8x32xf32>
    %116 = vector.extract_strided_slice %112 {offsets = [0, 32], sizes = [8, 32], strides = [1, 1]} : vector<8x128xf32> to vector<8x32xf32>
    %117 = vector.extract_strided_slice %112 {offsets = [0, 64], sizes = [8, 32], strides = [1, 1]} : vector<8x128xf32> to vector<8x32xf32>
    %118 = arith.mulf %116, %101 : vector<8x32xf32>
    %119 = arith.mulf %115, %114 : vector<8x32xf32>
    %120 = arith.addf %118, %119 : vector<8x32xf32>
    %121 = math.tanh %120 : vector<8x32xf32>
    %122 = arith.mulf %117, %121 : vector<8x32xf32>
    %123 = vector.extract_strided_slice %5 {offsets = [48, 0], sizes = [8, 128], strides = [1, 1]} : vector<64x128xf32> to vector<8x128xf32>
    %124 = arith.truncf %122 : vector<8x32xf32> to vector<8x32xbf16>
    %cst_21 = arith.constant dense<0.000000e+00> : vector<8x128xf32>
    %125 = tpu.matmul %124, %6, %cst_21 {dimension_numbers = #tpu.dot_dimension_numbers<[1], [0], [0], [1], [0, 0, 1, 1], [], []>} : vector<8x32xbf16>, vector<32x128xbf16>, vector<8x128xf32> -> vector<8x128xf32>
    %126 = arith.addf %123, %125 : vector<8x128xf32>
    %127 = arith.negf %126 : vector<8x128xf32>
    %128 = math.exp %127 : vector<8x128xf32>
    %cst_22 = arith.constant 1.000000e+00 : f32
    %129 = vector.broadcast %cst_22 : f32 to vector<8x128xf32>
    %130 = arith.addf %129, %128 : vector<8x128xf32>
    %131 = arith.divf %129, %130 : vector<8x128xf32>
    %132 = vector.extract_strided_slice %126 {offsets = [0, 96], sizes = [8, 32], strides = [1, 1]} : vector<8x128xf32> to vector<8x32xf32>
    %133 = math.tanh %132 : vector<8x32xf32>
    %134 = vector.extract_strided_slice %131 {offsets = [0, 0], sizes = [8, 32], strides = [1, 1]} : vector<8x128xf32> to vector<8x32xf32>
    %135 = vector.extract_strided_slice %131 {offsets = [0, 32], sizes = [8, 32], strides = [1, 1]} : vector<8x128xf32> to vector<8x32xf32>
    %136 = vector.extract_strided_slice %131 {offsets = [0, 64], sizes = [8, 32], strides = [1, 1]} : vector<8x128xf32> to vector<8x32xf32>
    %137 = arith.mulf %135, %120 : vector<8x32xf32>
    %138 = arith.mulf %134, %133 : vector<8x32xf32>
    %139 = arith.addf %137, %138 : vector<8x32xf32>
    %140 = math.tanh %139 : vector<8x32xf32>
    %141 = arith.mulf %136, %140 : vector<8x32xf32>
    %142 = vector.extract_strided_slice %5 {offsets = [56, 0], sizes = [8, 128], strides = [1, 1]} : vector<64x128xf32> to vector<8x128xf32>
    %143 = arith.truncf %141 : vector<8x32xf32> to vector<8x32xbf16>
    %cst_23 = arith.constant dense<0.000000e+00> : vector<8x128xf32>
    %144 = tpu.matmul %143, %6, %cst_23 {dimension_numbers = #tpu.dot_dimension_numbers<[1], [0], [0], [1], [0, 0, 1, 1], [], []>} : vector<8x32xbf16>, vector<32x128xbf16>, vector<8x128xf32> -> vector<8x128xf32>
    %145 = arith.addf %142, %144 : vector<8x128xf32>
    %146 = arith.negf %145 : vector<8x128xf32>
    %147 = math.exp %146 : vector<8x128xf32>
    %cst_24 = arith.constant 1.000000e+00 : f32
    %148 = vector.broadcast %cst_24 : f32 to vector<8x128xf32>
    %149 = arith.addf %148, %147 : vector<8x128xf32>
    %150 = arith.divf %148, %149 : vector<8x128xf32>
    %151 = vector.extract_strided_slice %145 {offsets = [0, 96], sizes = [8, 32], strides = [1, 1]} : vector<8x128xf32> to vector<8x32xf32>
    %152 = math.tanh %151 : vector<8x32xf32>
    %153 = vector.extract_strided_slice %150 {offsets = [0, 0], sizes = [8, 32], strides = [1, 1]} : vector<8x128xf32> to vector<8x32xf32>
    %154 = vector.extract_strided_slice %150 {offsets = [0, 32], sizes = [8, 32], strides = [1, 1]} : vector<8x128xf32> to vector<8x32xf32>
    %155 = vector.extract_strided_slice %150 {offsets = [0, 64], sizes = [8, 32], strides = [1, 1]} : vector<8x128xf32> to vector<8x32xf32>
    %156 = arith.mulf %154, %139 : vector<8x32xf32>
    %157 = arith.mulf %153, %152 : vector<8x32xf32>
    %158 = arith.addf %156, %157 : vector<8x32xf32>
    %159 = math.tanh %158 : vector<8x32xf32>
    %160 = arith.mulf %155, %159 : vector<8x32xf32>
    %161 = arith.truncf %160 : vector<8x32xf32> to vector<8x32xbf16>
    %c0_25 = arith.constant 0 : index
    %c0_26 = arith.constant 0 : index
    %162 = vector.load %arg4[%c0_25, %c0_26] : memref<32x4xbf16, #tpu.memory_space<vmem>>, vector<32x4xbf16>
    %cst_27 = arith.constant dense<0.000000e+00> : vector<8x4xf32>
    %163 = tpu.matmul %161, %162, %cst_27 {dimension_numbers = #tpu.dot_dimension_numbers<[1], [0], [0], [1], [0, 0, 1, 1], [], []>} : vector<8x32xbf16>, vector<32x4xbf16>, vector<8x4xf32> -> vector<8x4xf32>
    %c0_28 = arith.constant 0 : index
    %c0_29 = arith.constant 0 : index
    %164 = vector.load %arg5[%c0_28, %c0_29] : memref<1x4xf32, #tpu.memory_space<vmem>>, vector<1x4xf32>
    %165 = vector.broadcast %164 : vector<1x4xf32> to vector<8x4xf32>
    %166 = arith.addf %163, %165 : vector<8x4xf32>
    %c0_30 = arith.constant 0 : index
    %c0_31 = arith.constant 0 : index
    %167 = vector.load %arg6[%c0_30, %c0_31] : memref<8x4xf32, #tpu.memory_space<vmem>>, vector<8x4xf32>
    tpu.vector_store %arg6[%c0_30, %c0_31], %166 {strides = array<i32>} : memref<8x4xf32, #tpu.memory_space<vmem>>, vector<8x4xf32>,
    return
  }
}

</mosaic_0001>

<bundles_post_ra>
// kernel: tpu_custom_call.1
= control target key start
LH: loop header
LB: loop body
LE: loop exit
PB: predicated region body
PF: predicated region fallthrough
CT: control target
= control target key end

     0   :  { %v1033_v0 = vmov 0.0   ;;  %vm1034_vm0 = vmmov 0   ;;  %vm67_vm1 = vcmask 130048   ;;  %v1035_v6 = vmov 0   ;;  %s1036_s7 = smov 32   ;;  %s1237_s1 = inlined_call_operand.vmem [shape: bf16[16,128], index: 1, kind: input, shape index: {}]   ;;  %s1238_s2 = inlined_call_operand.vmem [shape: bf16[32,128], index: 2, kind: input, shape index: {}]   ;;  %s1239_s0 = inlined_call_operand.vmem [shape: bf16[64,16], index: 0, kind: input, shape index: {}]   ;;  %s1240_s3 = inlined_call_operand.vmem [shape: f32[1,128], index: 3, kind: input, shape index: {}]   ;;  %s1241_s4 = inlined_call_operand.vmem [shape: bf16[32,4], index: 4, kind: input, shape index: {}]   ;;  %s1242_s5 = inlined_call_operand.vmem [shape: f32[1,4], index: 5, kind: input, shape index: {}]   ;;  %s1243_s6 = inlined_call_operand.vmem [shape: f32[8,4], index: 6, kind: output, shape index: {}]  }
   0x1   :  { %883 = vmatprep.subr.bf16.mxu1 %v1033_v0  ;;  %v960_v1 = vld [vmem:[%s1237_s1] sm:$0xff]   ;;  %887 = vmatprep.mubr.msk.bf16.mxu1 %vm1034_vm0, %v1033_v0  ;;  %v963_v4 = vld [vmem:[%s1239_s0 + $0x8] sm:$0xff]   ;;  %vm161_vm2 = vcmask 261120   ;;  %v965_v49 = vld [vmem:[%s1239_s0 + $0x10] sm:$0xff]   ;;  %vm804_vm3 = vcmask 31744  }
   0x2   :  { %v1082_v2 = vld [vmem:[%s1238_s2] sm:$0xff]   ;;  %873 = vmatprep.subr.bf16.mxu0 %v960_v1  ;;  %v1096_v5 = vld [vmem:[%s1238_s2 + $0x8] sm:$0xff]   ;;  %v966_v50 = vld [vmem:[%s1239_s0 + $0x18] sm:$0xff]  }
   0x3   :  { %v962_v3 = vld [vmem:[%s1239_s0] sm:$0xff]   ;;  %884 = vmatpush3.bf16.msra.mxu1 %v1082_v2  ;;  %874 = vmatpush3.bf16.msra.mxu0 %v960_v1 }
   0x4   :  { %875 = vmatprep.mubr.msk.bf16.mxu0 %vm67_vm1, %v962_v3  ;;  %885 = vmatprep.subr.bf16.mxu1 %v1033_v0  ;;  %v1115_v7 = vld [vmem:[%s1240_s3] ss:$0 sm:$0xff]  ;;  %s1037_s3 = smov 64  }
   0x5   :  { %899 = vmatprep.subr.bf16.mxu0 %v1033_v0 }
   0x6   :  { %876 = vmatmul.mubr.msk.bf16.vlgmr.msra.gmra.mrb[0].mxu0 %vm67_vm1, %v963_v4 }
   0x7   :  { %886 = vmatpush3.bf16.msra.mxu1 %v1096_v5  ;;  %900 = vmatpush3.bf16.msra.mxu0 %v1082_v2 }
   0x8   :  { %891 = vmatprep.subr.bf16.mxu1 %v1033_v0  ;;  %901 = vmatprep.subr.bf16.mxu0 %v1033_v0 }
   0x9   :  { %879 = vmatprep.mubr.msk.bf16.mxu0 %vm67_vm1, %v965_v49 }
   0xa   :  { %888 = vmatmul.mubr.bf16.vlgmr.msra.gmra.mrb[0].mxu1 %v1035_v6 }
   0xb   :  { %892 = vmatpush3.bf16.msra.mxu1 %v1082_v2  ;;  %895 = vmatprep.mubr.msk.bf16.mxu1 %vm1034_vm0, %v1033_v0 }
   0xc   :  { %893 = vmatprep.subr.bf16.mxu1 %v1033_v0  ;;  %902 = vmatpush3.bf16.msra.mxu0 %v1096_v5 }
   0xd   :  { %915 = vmatprep.subr.bf16.mxu0 %v1033_v0 }
   0xe   :  { %880 = vmatmul.mubr.msk.bf16.gmra.mrb[4].mxu0 %vm67_vm1, %v966_v50 }
   0xf   :  { %894 = vmatpush3.bf16.msra.mxu1 %v1096_v5  ;;  %903 = vmatprep.mubr.msk.bf16.mxu0 %vm1034_vm0, %v1033_v0 }
  0x10   :  { %907 = vmatprep.subr.bf16.mxu1 %v1033_v0 }
  0xd9   :  { %v1117_v8 = vpop.f32.mrb[0].mxu0 }
  0xda   :  { %v114_v9 = vpop.f32.mrb[1].mxu0  ;;  %v123_v60 = vadd.f32 %v1117_v8, %v1115_v7 }
  0xdb   :  { %v115_v10 = vadd.f32 %v1115_v7, %v114_v9  ;;  %v1120_v11 = vpop.f32.mrb[2].mxu0 }
  0xdc   :  { %v117_v12 = vpop.f32.mrb[3].mxu0 }
  0xdd   :  { %v199_v13 = vpop.f32.mrb[0].mxu1  ;;  %v118_v33 = vadd.f32 %v1115_v7, %v117_v12 }
  0xde   :  { %v205_v14 = vadd.f32 %v199_v13, %v115_v10  ;;  %v889_v15 = vpop.f32.mrb[1].mxu1 }
  0xdf   :  { %v202_v16 = vpop.f32.mrb[2].mxu1 }
  0xe0   :  { %969 = vtanh.f32 %v205_v14  ;;  %v890_v17 = vpop.f32.mrb[3].mxu1  ;;  %v822_v19 = vmul.f32 -1.442695, %v205_v14 }
  0xe1   :  { %v1148_v55 = vpop.f32.mrb[4].mxu0 }
  0xe2   :  { %971 = vpow2.f32 %v822_v19  ;;  %v1150_v56 = vpop.f32.mrb[5].mxu0 }
  0xe3   :  { %v1152_v57 = vpop.f32.mrb[6].mxu0 }
  0xe4   :  { %v1154_v58 = vpop.f32.mrb[7].mxu0 }
  0xea   :  { %v970_v18 = vpop.eup %969 }
  0xeb   :  { %215 = vrot.lane.b32.xlu0 %v970_v18, %s1036_s7 }
  0xec   :  { %v972_v20 = vpop.eup %971 }
  0xed   :  { %v209_v21 = vadd.f32 1.0, %v972_v20 }
  0xef   :  { %973 = vrcp.f32 %v209_v21 }
  0xf9   :  { %v974_v22 = vpop.eup %973 }
  0xfa   :  { %v213_v25 = vmul.f32 0.0, %v974_v22 }
 0x15d   :  { %v216_v23 = vpop.permute.xlu0 %215 }
 0x15e   :  { %v218_v24 = vmul.f32 %v974_v22, %v216_v23 }
 0x160   :  { %220 = vrot.lane.b32.xlu0 %v218_v24, %s1036_s7 }
 0x1d2   :  { %v221_v26 = vpop.permute.xlu0 %220 }
 0x1d3   :  { %v223_v27 = vadd.f32 %v221_v26, %v213_v25 }
 0x1d5   :  { %975 = vtanh.f32 %v223_v27 }
 0x1df   :  { %v976_v28 = vpop.eup %975 }
 0x1e0   :  { %226 = vrot.lane.b32.xlu1 %v976_v28, %s1036_s7 }
 0x252   :  { %v227_v29 = vpop.permute.xlu1 %226 }
 0x253   :  { %v229_v30 = vmul.f32 %v974_v22, %v227_v29  ;;  %v126_v22 = vadd.f32 %v1120_v11, %v1115_v7 }
 0x255   :  { %v230_v31 = vpack.c.bf16 %v229_v30, %v229_v30 }
 0x257   :  { %232 = vrot.lane.b32.xlu1 %v230_v31, %s1037_s3 }
 0x2c9   :  { %v233_v32 = vpop.permute.xlu1 %232 }
 0x2ca   :  { %896 = vmatmul.mubr.msk.bf16.vlgmr.msra.gmra.mrb[4].mxu1 %vm161_vm2, %v233_v32 }
 0x2cb   :  { %908 = vmatpush3.bf16.msra.mxu1 %v1082_v2  ;;  %911 = vmatprep.mubr.msk.bf16.mxu1 %vm1034_vm0, %v1033_v0 }
 0x2cc   :  { %909 = vmatprep.subr.bf16.mxu1 %v1033_v0 }
 0x2cf   :  { %910 = vmatpush3.bf16.msra.mxu1 %v1096_v5 }
 0x2d0   :  { %923 = vmatprep.subr.bf16.mxu1 %v1033_v0 }
 0x39d   :  { %v271_v34 = vpop.f32.mrb[4].mxu1 }
 0x39e   :  { %v277_v35 = vadd.f32 %v271_v34, %v118_v33  ;;  %v897_v36 = vpop.f32.mrb[5].mxu1 }
 0x39f   :  { %v274_v37 = vpop.f32.mrb[6].mxu1 }
 0x3a0   :  { %977 = vtanh.f32 %v277_v35  ;;  %v898_v38 = vpop.f32.mrb[7].mxu1  ;;  %v824_v40 = vmul.f32 -1.442695, %v277_v35 }
 0x3a2   :  { %979 = vpow2.f32 %v824_v40 }
 0x3aa   :  { %v978_v39 = vpop.eup %977 }
 0x3ab   :  { %287 = vrot.lane.b32.xlu0 %v978_v39, %s1036_s7 }
 0x3ac   :  { %v980_v41 = vpop.eup %979 }
 0x3ad   :  { %v281_v42 = vadd.f32 1.0, %v980_v41 }
 0x3af   :  { %981 = vrcp.f32 %v281_v42  ;;  %v131_v42 = vadd.f32 %v1115_v7, %v1150_v56 }
 0x3b9   :  { %v982_v43 = vpop.eup %981 }
 0x3ba   :  { %v285_v46 = vmul.f32 %v982_v43, %v223_v27 }
 0x41d   :  { %v288_v44 = vpop.permute.xlu0 %287 }
 0x41e   :  { %v290_v45 = vmul.f32 %v982_v43, %v288_v44 }
 0x420   :  { %292 = vrot.lane.b32.xlu1 %v290_v45, %s1036_s7 }
 0x492   :  { %v293_v47 = vpop.permute.xlu1 %292 }
 0x493   :  { %v295_v48 = vadd.f32 %v293_v47, %v285_v46 }
 0x495   :  { %983 = vtanh.f32 %v295_v48 }
 0x49f   :  { %v984_v51 = vpop.eup %983 }
 0x4a0   :  { %298 = vrot.lane.b32.xlu0 %v984_v51, %s1036_s7 }
 0x512   :  { %v299_v52 = vpop.permute.xlu0 %298 }
 0x513   :  { %v301_v53 = vmul.f32 %v982_v43, %v299_v52 }
 0x515   :  { %v302_v54 = vpack.c.bf16 %v301_v53, %v301_v53 }
 0x517   :  { %304 = vrot.lane.b32.xlu1 %v302_v54, %s1037_s3 }
 0x589   :  { %v305_v59 = vpop.permute.xlu1 %304 }
 0x58a   :  { %904 = vmatmul.mubr.msk.bf16.vlgmr.msra.gmra.mrb[8].mxu0 %vm161_vm2, %v305_v59 }
 0x58b   :  { %916 = vmatpush3.bf16.msra.mxu0 %v1082_v2  ;;  %919 = vmatprep.mubr.msk.bf16.mxu0 %vm1034_vm0, %v1033_v0 }
 0x58c   :  { %917 = vmatprep.subr.bf16.mxu0 %v1033_v0 }
 0x58f   :  { %918 = vmatpush3.bf16.msra.mxu0 %v1096_v5 }
 0x590   :  { %931 = vmatprep.subr.bf16.mxu0 %v1033_v0 }
 0x65d   :  { %v343_v61 = vpop.f32.mrb[8].mxu0 }
 0x65e   :  { %v349_v62 = vadd.f32 %v343_v61, %v123_v60  ;;  %v905_v63 = vpop.f32.mrb[9].mxu0 }
 0x65f   :  { %v346_v1 = vpop.f32.mrb[10].mxu0 }
 0x660   :  { %985 = vtanh.f32 %v349_v62  ;;  %v906_v3 = vpop.f32.mrb[11].mxu0  ;;  %v826_v6 = vmul.f32 -1.442695, %v349_v62 }
 0x662   :  { %987 = vpow2.f32 %v826_v6 }
 0x66a   :  { %v986_v4 = vpop.eup %985 }
 0x66b   :  { %359 = vrot.lane.b32.xlu0 %v986_v4, %s1036_s7  ;;  %v134_v4 = vadd.f32 %v1115_v7, %v1154_v58 }
 0x66c   :  { %v988_v9 = vpop.eup %987 }
 0x66d   :  { %v353_v10 = vadd.f32 1.0, %v988_v9 }
 0x66f   :  { %989 = vrcp.f32 %v353_v10 }
 0x679   :  { %v990_v12 = vpop.eup %989 }
 0x67a   :  { %v357_v8 = vmul.f32 %v990_v12, %v295_v48 }
 0x6dd   :  { %v360_v13 = vpop.permute.xlu0 %359 }
 0x6de   :  { %v362_v14 = vmul.f32 %v990_v12, %v360_v13 }
 0x6e0   :  { %364 = vrot.lane.b32.xlu1 %v362_v14, %s1036_s7 }
 0x752   :  { %v365_v15 = vpop.permute.xlu1 %364 }
 0x753   :  { %v367_v16 = vadd.f32 %v365_v15, %v357_v8 }
 0x755   :  { %991 = vtanh.f32 %v367_v16 }
 0x75f   :  { %v992_v17 = vpop.eup %991 }
 0x760   :  { %370 = vrot.lane.b32.xlu0 %v992_v17, %s1036_s7 }
 0x7d2   :  { %v371_v18 = vpop.permute.xlu0 %370 }
 0x7d3   :  { %v373_v19 = vmul.f32 %v990_v12, %v371_v18 }
 0x7d5   :  { %v374_v20 = vpack.c.bf16 %v373_v19, %v373_v19 }
 0x7d7   :  { %376 = vrot.lane.b32.xlu1 %v374_v20, %s1037_s3 }
 0x849   :  { %v377_v21 = vpop.permute.xlu1 %376 }
 0x84a   :  { %912 = vmatmul.mubr.msk.bf16.vlgmr.msra.gmra.mrb[8].mxu1 %vm161_vm2, %v377_v21 }
 0x84b   :  { %924 = vmatpush3.bf16.msra.mxu1 %v1082_v2  ;;  %927 = vmatprep.mubr.msk.bf16.mxu1 %vm1034_vm0, %v1033_v0 }
 0x84c   :  { %925 = vmatprep.subr.bf16.mxu1 %v1033_v0 }
 0x84f   :  { %926 = vmatpush3.bf16.msra.mxu1 %v1096_v5 }
 0x850   :  { %939 = vmatprep.subr.bf16.mxu1 %v1033_v0 }
 0x91d   :  { %v415_v23 = vpop.f32.mrb[8].mxu1 }
 0x91e   :  { %v421_v24 = vadd.f32 %v415_v23, %v126_v22  ;;  %v913_v25 = vpop.f32.mrb[9].mxu1 }
 0x91f   :  { %v418_v26 = vpop.f32.mrb[10].mxu1  ;;  %v139_v25 = vadd.f32 %v1148_v55, %v1115_v7 }
 0x920   :  { %993 = vtanh.f32 %v421_v24  ;;  %v914_v27 = vpop.f32.mrb[11].mxu1  ;;  %v828_v29 = vmul.f32 -1.442695, %v421_v24 }
 0x922   :  { %995 = vpow2.f32 %v828_v29 }
 0x92a   :  { %v994_v28 = vpop.eup %993 }
 0x92b   :  { %431 = vrot.lane.b32.xlu0 %v994_v28, %s1036_s7 }
 0x92c   :  { %v996_v30 = vpop.eup %995 }
 0x92d   :  { %v425_v31 = vadd.f32 1.0, %v996_v30 }
 0x92f   :  { %997 = vrcp.f32 %v425_v31 }
 0x939   :  { %v998_v32 = vpop.eup %997 }
 0x93a   :  { %v429_v11 = vmul.f32 %v998_v32, %v367_v16 }
 0x99d   :  { %v432_v33 = vpop.permute.xlu0 %431 }
 0x99e   :  { %v434_v34 = vmul.f32 %v998_v32, %v432_v33 }
 0x9a0   :  { %436 = vrot.lane.b32.xlu1 %v434_v34, %s1036_s7 }
 0xa12   :  { %v437_v35 = vpop.permute.xlu1 %436 }
 0xa13   :  { %v439_v36 = vadd.f32 %v437_v35, %v429_v11 }
 0xa15   :  { %999 = vtanh.f32 %v439_v36 }
 0xa1f   :  { %v1000_v37 = vpop.eup %999 }
 0xa20   :  { %442 = vrot.lane.b32.xlu0 %v1000_v37, %s1036_s7 }
 0xa92   :  { %v443_v38 = vpop.permute.xlu0 %442 }
 0xa93   :  { %v445_v39 = vmul.f32 %v998_v32, %v443_v38 }
 0xa95   :  { %v446_v40 = vpack.c.bf16 %v445_v39, %v445_v39 }
 0xa97   :  { %448 = vrot.lane.b32.xlu1 %v446_v40, %s1037_s3 }
 0xb09   :  { %v449_v41 = vpop.permute.xlu1 %448 }
 0xb0a   :  { %920 = vmatmul.mubr.msk.bf16.vlgmr.msra.gmra.mrb[12].mxu0 %vm161_vm2, %v449_v41 }
 0xb0b   :  { %932 = vmatpush3.bf16.msra.mxu0 %v1082_v2  ;;  %935 = vmatprep.mubr.msk.bf16.mxu0 %vm1034_vm0, %v1033_v0 }
 0xb0c   :  { %933 = vmatprep.subr.bf16.mxu0 %v1033_v0 }
 0xb0f   :  { %934 = vmatpush3.bf16.msra.mxu0 %v1096_v5 }
 0xb10   :  { %947 = vmatprep.subr.bf16.mxu0 %v1033_v0 }
 0xbdd   :  { %v487_v43 = vpop.f32.mrb[12].mxu0 }
 0xbde   :  { %v493_v44 = vadd.f32 %v487_v43, %v131_v42  ;;  %v921_v45 = vpop.f32.mrb[13].mxu0 }
 0xbdf   :  { %v490_v46 = vpop.f32.mrb[14].mxu0 }
 0xbe0   :  { %1001 = vtanh.f32 %v493_v44  ;;  %v922_v47 = vpop.f32.mrb[15].mxu0  ;;  %v830_v49 = vmul.f32 -1.442695, %v493_v44  ;;  %v142_v44 = vadd.f32 %v1152_v57, %v1115_v7 }
 0xbe2   :  { %1003 = vpow2.f32 %v830_v49 }
 0xbea   :  { %v1002_v48 = vpop.eup %1001 }
 0xbeb   :  { %503 = vrot.lane.b32.xlu0 %v1002_v48, %s1036_s7 }
 0xbec   :  { %v1004_v50 = vpop.eup %1003 }
 0xbed   :  { %v497_v51 = vadd.f32 1.0, %v1004_v50 }
 0xbef   :  { %1005 = vrcp.f32 %v497_v51 }
 0xbf9   :  { %v1006_v52 = vpop.eup %1005 }
 0xbfa   :  { %v501_v56 = vmul.f32 %v1006_v52, %v439_v36 }
 0xc5d   :  { %v504_v53 = vpop.permute.xlu0 %503 }
 0xc5e   :  { %v506_v54 = vmul.f32 %v1006_v52, %v504_v53 }
 0xc60   :  { %508 = vrot.lane.b32.xlu1 %v506_v54, %s1036_s7 }
 0xcd2   :  { %v509_v59 = vpop.permute.xlu1 %508 }
 0xcd3   :  { %v511_v60 = vadd.f32 %v509_v59, %v501_v56 }
 0xcd5   :  { %1007 = vtanh.f32 %v511_v60 }
 0xcdf   :  { %v1008_v61 = vpop.eup %1007 }
 0xce0   :  { %514 = vrot.lane.b32.xlu0 %v1008_v61, %s1036_s7  ;;  %v967_v61 = vld [vmem:[%s1241_s4] sm:$0xff]  }
 0xd52   :  { %v515_v62 = vpop.permute.xlu0 %514 }
 0xd53   :  { %v517_v63 = vmul.f32 %v1006_v52, %v515_v62  ;;  %v968_v62 = vld [vmem:[%s1241_s4 + $0x8] sm:$0xff]  }
 0xd55   :  { %v518_v1 = vpack.c.bf16 %v517_v63, %v517_v63 }
 0xd57   :  { %520 = vrot.lane.b32.xlu1 %v518_v1, %s1037_s3 }
 0xdc9   :  { %v521_v3 = vpop.permute.xlu1 %520 }
 0xdca   :  { %928 = vmatmul.mubr.msk.bf16.vlgmr.msra.gmra.mrb[12].mxu1 %vm161_vm2, %v521_v3 }
 0xdcb   :  { %940 = vmatpush3.bf16.msra.mxu1 %v1082_v2  ;;  %943 = vmatprep.mubr.msk.bf16.mxu1 %vm1034_vm0, %v1033_v0 }
 0xdcc   :  { %941 = vmatprep.subr.bf16.mxu1 %v1033_v0 }
 0xdcf   :  { %942 = vmatpush3.bf16.msra.mxu1 %v1096_v5 }
 0xe9d   :  { %v559_v6 = vpop.f32.mrb[12].mxu1 }
 0xe9e   :  { %v565_v9 = vadd.f32 %v559_v6, %v134_v4  ;;  %v929_v10 = vpop.f32.mrb[13].mxu1 }
 0xe9f   :  { %v562_v12 = vpop.f32.mrb[14].mxu1 }
 0xea0   :  { %1009 = vtanh.f32 %v565_v9  ;;  %v930_v13 = vpop.f32.mrb[15].mxu1  ;;  %v832_v2 = vmul.f32 -1.442695, %v565_v9  ;;  %v837_v9 = vld [vmem:[%s1242_s5] ss:$0 sm:$0xff] }
 0xea2   :  { %1011 = vpow2.f32 %v832_v2 }
 0xeaa   :  { %v1010_v14 = vpop.eup %1009 }
 0xeab   :  { %575 = vrot.lane.b32.xlu0 %v1010_v14, %s1036_s7 }
 0xeac   :  { %v1012_v8 = vpop.eup %1011 }
 0xead   :  { %v569_v15 = vadd.f32 1.0, %v1012_v8 }
 0xeaf   :  { %1013 = vrcp.f32 %v569_v15 }
 0xeb9   :  { %v1014_v16 = vpop.eup %1013 }
 0xeba   :  { %v573_v58 = vmul.f32 %v1014_v16, %v511_v60 }
 0xf1d   :  { %v576_v17 = vpop.permute.xlu0 %575 }
 0xf1e   :  { %v578_v5 = vmul.f32 %v1014_v16, %v576_v17 }
 0xf20   :  { %580 = vrot.lane.b32.xlu1 %v578_v5, %s1036_s7 }
 0xf92   :  { %v581_v18 = vpop.permute.xlu1 %580 }
 0xf93   :  { %v583_v19 = vadd.f32 %v581_v18, %v573_v58 }
 0xf95   :  { %1015 = vtanh.f32 %v583_v19 }
 0xf9f   :  { %v1016_v20 = vpop.eup %1015 }
 0xfa0   :  { %586 = vrot.lane.b32.xlu0 %v1016_v20, %s1036_s7 }
0x1012   :  { %v587_v21 = vpop.permute.xlu0 %586 }
0x1013   :  { %v589_v22 = vmul.f32 %v1014_v16, %v587_v21 }
0x1015   :  { %v590_v23 = vpack.c.bf16 %v589_v22, %v589_v22 }
0x1017   :  { %592 = vrot.lane.b32.xlu1 %v590_v23, %s1037_s3 }
0x1089   :  { %v593_v24 = vpop.permute.xlu1 %592 }
0x108a   :  { %936 = vmatmul.mubr.msk.bf16.vlgmr.msra.gmra.mrb[16].mxu0 %vm161_vm2, %v593_v24 }
0x108b   :  { %951 = vmatprep.mubr.msk.bf16.mxu0 %vm1034_vm0, %v1033_v0  ;;  %948 = vmatpush3.bf16.msra.mxu0 %v967_v61 }
0x108c   :  { %949 = vmatprep.subr.bf16.mxu0 %v1033_v0 }
0x108f   :  { %950 = vmatpush3.bf16.msra.mxu0 %v968_v62 }
0x115d   :  { %v631_v26 = vpop.f32.mrb[16].mxu0 }
0x115e   :  { %v637_v27 = vadd.f32 %v631_v26, %v139_v25  ;;  %v937_v28 = vpop.f32.mrb[17].mxu0 }
0x115f   :  { %v634_v29 = vpop.f32.mrb[18].mxu0 }
0x1160   :  { %1017 = vtanh.f32 %v637_v27  ;;  %v938_v30 = vpop.f32.mrb[19].mxu0  ;;  %v834_v32 = vmul.f32 -1.442695, %v637_v27 }
0x1162   :  { %1019 = vpow2.f32 %v834_v32 }
0x116a   :  { %v1018_v31 = vpop.eup %1017 }
0x116b   :  { %647 = vrot.lane.b32.xlu0 %v1018_v31, %s1036_s7 }
0x116c   :  { %v1020_v33 = vpop.eup %1019 }
0x116d   :  { %v641_v34 = vadd.f32 1.0, %v1020_v33 }
0x116f   :  { %1021 = vrcp.f32 %v641_v34 }
0x1179   :  { %v1022_v11 = vpop.eup %1021 }
0x117a   :  { %v645_v55 = vmul.f32 %v1022_v11, %v583_v19 }
0x11dd   :  { %v648_v35 = vpop.permute.xlu0 %647 }
0x11de   :  { %v650_v36 = vmul.f32 %v1022_v11, %v648_v35 }
0x11e0   :  { %652 = vrot.lane.b32.xlu1 %v650_v36, %s1036_s7 }
0x1252   :  { %v653_v37 = vpop.permute.xlu1 %652 }
0x1253   :  { %v655_v38 = vadd.f32 %v653_v37, %v645_v55 }
0x1255   :  { %1023 = vtanh.f32 %v655_v38 }
0x125f   :  { %v1024_v39 = vpop.eup %1023 }
0x1260   :  { %658 = vrot.lane.b32.xlu0 %v1024_v39, %s1036_s7 }
0x12d2   :  { %v659_v40 = vpop.permute.xlu0 %658 }
0x12d3   :  { %v661_v41 = vmul.f32 %v1022_v11, %v659_v40 }
0x12d5   :  { %v662_v42 = vpack.c.bf16 %v661_v41, %v661_v41 }
0x12d7   :  { %664 = vrot.lane.b32.xlu1 %v662_v42, %s1037_s3 }
0x1349   :  { %v665_v43 = vpop.permute.xlu1 %664 }
0x134a   :  { %944 = vmatmul.mubr.msk.bf16.vlgmr.msra.gmra.mrb[16].mxu1 %vm161_vm2, %v665_v43 }
0x141d   :  { %v703_v45 = vpop.f32.mrb[16].mxu1 }
0x141e   :  { %v709_v46 = vadd.f32 %v703_v45, %v142_v44  ;;  %v945_v47 = vpop.f32.mrb[17].mxu1 }
0x141f   :  { %v706_v48 = vpop.f32.mrb[18].mxu1 }
0x1420   :  { %1025 = vtanh.f32 %v709_v46  ;;  %v946_v49 = vpop.f32.mrb[19].mxu1  ;;  %v836_v51 = vmul.f32 -1.442695, %v709_v46 }
0x1422   :  { %1027 = vpow2.f32 %v836_v51 }
0x142a   :  { %v1026_v50 = vpop.eup %1025 }
0x142b   :  { %719 = vrot.lane.b32.xlu0 %v1026_v50, %s1036_s7 }
0x142c   :  { %v1028_v52 = vpop.eup %1027 }
0x142d   :  { %v713_v53 = vadd.f32 1.0, %v1028_v52 }
0x142f   :  { %1029 = vrcp.f32 %v713_v53 }
0x1439   :  { %v1030_v54 = vpop.eup %1029 }
0x143a   :  { %v717_v7 = vmul.f32 %v1030_v54, %v655_v38 }
0x149d   :  { %v720_v56 = vpop.permute.xlu0 %719 }
0x149e   :  { %v722_v59 = vmul.f32 %v1030_v54, %v720_v56 }
0x14a0   :  { %724 = vrot.lane.b32.xlu1 %v722_v59, %s1036_s7 }
0x1512   :  { %v725_v57 = vpop.permute.xlu1 %724 }
0x1513   :  { %v727_v60 = vadd.f32 %v725_v57, %v717_v7 }
0x1515   :  { %1031 = vtanh.f32 %v727_v60 }
0x151f   :  { %v1032_v63 = vpop.eup %1031 }
0x1520   :  { %730 = vrot.lane.b32.xlu0 %v1032_v63, %s1036_s7 }
0x1592   :  { %v731_v1 = vpop.permute.xlu0 %730 }
0x1593   :  { %v733_v3 = vmul.f32 %v1030_v54, %v731_v1 }
0x1595   :  { %v734_v4 = vpack.c.bf16 %v733_v3, %v733_v3 }
0x1597   :  { %747 = vrot.lane.b32.xlu1 %v734_v4, %s1037_s3 }
0x1609   :  { %v748_v6 = vpop.permute.xlu1 %747 }
0x160a   :  { %952 = vmatmul.mubr.msk.bf16.vlgmr.msra.gmra.mrb[20].mxu0 %vm161_vm2, %v748_v6 }
0x16dd   :  { %v798_v10 = vpop.f32.mrb[20].mxu0 }
0x16de   :  { %v799_v12 = vadd.f32 %v837_v9, %v798_v10  ;;  %v953_v0 = vpop.f32.mrb[21].mxu0 }
0x16df   :  { %v801_v13 = vpop.f32.mrb[22].mxu0 }
0x16e0   :  { %805 = vst.msk [vmem:[%s1243_s6] sm:$0xff] %vm804_vm3, %v799_v12  ;;  %v954_v14 = vpop.f32.mrb[23].mxu0 }

</bundles_post_ra>
